<compile_context>
chip_gen: v7x
topology: tpu7x:2x2x1
jax: 0.10.0
libtpu: 0.0.40
codegen_flags: <defaults>
</compile_context>

<pallas_src>
import functools

import numpy as np
import jax
import jax.numpy as jnp
from jax.experimental import pallas as pl
from jax.experimental.pallas import tpu as pltpu

_BN_EPS = 1e-5


# ----------------------------------------------------------------------------
# Trace-time operand preparation: fold conv / deconv (incl. stride + padding +
# im2col) into dense matrices so the kernel only does plain matmuls.
# ----------------------------------------------------------------------------
def _conv_pair_matrix(w_kk, H, W, k, stride, pad):
    """Dense (H*W, OH*OW) operand for one (c_out, c_in) pair of a strided, padded
    Conv2d. Padding taps are simply omitted (they contribute zero)."""
    OH = (H + 2 * pad - k) // stride + 1
    OW = (W + 2 * pad - k) // stride + 1
    rows, cols, taps = [], [], []
    for oh in range(OH):
        for ow in range(OW):
            for kh in range(k):
                for kw in range(k):
                    h = oh * stride + kh - pad
                    w = ow * stride + kw - pad
                    if 0 <= h < H and 0 <= w < W:
                        rows.append(h * W + w)
                        cols.append(oh * OW + ow)
                        taps.append(kh * k + kw)
    vals = w_kk.reshape(-1)[np.asarray(taps, np.int32)]
    m = jnp.zeros((H * W, OH * OW), jnp.float32)
    return m.at[np.asarray(rows, np.int32), np.asarray(cols, np.int32)].set(vals)


def _deconv_pair_matrix(w_kk, H, W, k, stride):
    """Dense (H*W, OH*OW) operand for one (c_in, c_out) pair of a ConvTranspose2d
    with kernel == stride (non-overlapping scatter)."""
    OH, OW = (H - 1) * stride + k, (W - 1) * stride + k
    rows, cols, taps = [], [], []
    for ih in range(H):
        for iw in range(W):
            for kh in range(k):
                for kw in range(k):
                    rows.append(ih * W + iw)
                    cols.append((ih * stride + kh) * OW + (iw * stride + kw))
                    taps.append(kh * k + kw)
    vals = w_kk.reshape(-1)[np.asarray(taps, np.int32)]
    m = jnp.zeros((H * W, OH * OW), jnp.float32)
    return m.at[np.asarray(rows, np.int32), np.asarray(cols, np.int32)].set(vals)


# ----------------------------------------------------------------------------
# Parameters (deterministic, Kaiming-normal style for convs)
# ----------------------------------------------------------------------------
def init_params(key):
    ks = jax.random.split(key, 10)

    def kaiming(k_, fan_in, shape):
        return jax.random.normal(k_, shape, jnp.float32) * jnp.sqrt(2.0 / fan_in)

    p = {}
    p["w1"] = kaiming(ks[0], 1 * 9, (2, 1, 3, 3))     # Conv2d(1,2,3,s=2,p=1)
    p["w2"] = kaiming(ks[1], 2 * 9, (1, 2, 3, 3))     # Conv2d(2,1,3,s=2,p=1)
    p["wenc"] = jax.random.normal(ks[2], (16, 50), jnp.float32) / jnp.sqrt(16.0)
    p["benc"] = jax.random.normal(ks[3], (50,), jnp.float32) * 0.05
    p["wdec"] = jax.random.normal(ks[4], (50, 16), jnp.float32) / jnp.sqrt(50.0)
    p["bdec"] = jax.random.normal(ks[5], (16,), jnp.float32) * 0.05
    p["wd1"] = jax.random.normal(ks[6], (1, 2, 2, 2), jnp.float32) * 0.5   # ConvT(1,2,k2,s2)
    p["wd2"] = jax.random.normal(ks[7], (2, 1, 2, 2), jnp.float32) * 0.5   # ConvT(2,1,k2,s2)
    p["wout"] = kaiming(ks[8], 1, (1, 1, 1, 1))        # Conv2d(1,1,k=1)
    p["bout"] = jax.random.normal(ks[9], (1,), jnp.float32) * 0.05
    # Conv/deconv biases are omitted: with train-mode BN (gamma=1, beta=0) right
    # after each conv, the per-channel bias is exactly cancelled by mean subtraction.
    return p


def prepare_operands(params):
    """Build the dense, channel-concatenated kernel operands once per model."""
    # Encoder conv1: Conv(1->2, k3, s2, p1), 16x16 -> 8x8 ; lanes [0,64)=ch0, [64,128)=ch1
    A1 = jnp.concatenate(
        [_conv_pair_matrix(params["w1"][0, 0], 16, 16, 3, 2, 1),
         _conv_pair_matrix(params["w1"][1, 0], 16, 16, 3, 2, 1)], axis=1)      # (256,128)
    # Encoder conv2: Conv(2->1, k3, s2, p1), 8x8 -> 4x4 ; rows [0,64)=in-ch0, [64,128)=in-ch1
    A2 = jnp.concatenate(
        [_conv_pair_matrix(params["w2"][0, 0], 8, 8, 3, 2, 1),
         _conv_pair_matrix(params["w2"][0, 1], 8, 8, 3, 2, 1)], axis=0)        # (128,16)
    # Decoder deconv1: ConvT(1->2, k2, s2), 4x4 -> 8x8 ; lanes [0,64)=ch0, [64,128)=ch1
    D1 = jnp.concatenate(
        [_deconv_pair_matrix(params["wd1"][0, 0], 4, 4, 2, 2),
         _deconv_pair_matrix(params["wd1"][0, 1], 4, 4, 2, 2)], axis=1)        # (16,128)
    # Decoder deconv2: ConvT(2->1, k2, s2), 8x8 -> 16x16 ; rows [0,64)=in-ch0, [64,128)=in-ch1
    D2 = jnp.concatenate(
        [_deconv_pair_matrix(params["wd2"][0, 0], 8, 8, 2, 2),
         _deconv_pair_matrix(params["wd2"][1, 0], 8, 8, 2, 2)], axis=0)        # (128,256)

    # Fold the purely linear chain Linear(16,50) -> Linear(50,16) -> deconv1 (there is
    # no nonlinearity between the encoder Linear and the decoder Linear in the model).
    wenc, wdec = params["wenc"], params["wdec"]
    benc, bdec = params["benc"].reshape(1, 50), params["bdec"].reshape(1, 16)
    M = wenc @ wdec @ D1                                                        # (16,128)
    bfused = (benc @ wdec + bdec) @ D1                                          # (1,128)

    return {
        "scal": jnp.stack([params["wout"].reshape(()),
                           params["bout"].reshape(())]).astype(jnp.float32),    # (2,) SMEM
        "A1": A1.astype(jnp.bfloat16),      # (256, 128)
        "A2": A2.astype(jnp.bfloat16),      # (128, 16)
        "M":  M.astype(jnp.bfloat16),       # (16, 128)
        "bf": bfused.astype(jnp.float32),   # (1, 128)  (kept f32; added post-MXU)
        "D2": D2.astype(jnp.bfloat16),      # (128, 256)
    }


# ----------------------------------------------------------------------------
# Fused Pallas kernel: entire CONV_AE forward, all intermediates VMEM-resident
# ----------------------------------------------------------------------------
def _conv_ae_kernel(scal_ref, x_ref, a1_ref, a2_ref, m_ref, bf_ref, d2_ref, o_ref):
    def dot(a, w):
        # bf16 on the MXU, f32 accumulation; BN math stays f32 (v5e VPU has no bf16).
        return jnp.dot(a.astype(jnp.bfloat16), w, preferred_element_type=jnp.float32)

    # Lane mask selecting channel 0 of the 2-channel (N,128) slabs.
    lane = jax.lax.broadcasted_iota(jnp.int32, (1, 128), 1)
    is_c0 = lane < 64

    def bn_relu_1ch(y):
        # Training-mode BN (gamma=1, beta=0, biased var) on a single-channel slab.
        # Sublane (batch) reduce first (VALU), then one cross-lane reduce (XLU);
        # sum and sum-of-squares in one pass, var = E[y^2] - E[y]^2.
        cnt = float(y.shape[0] * y.shape[1])
        col = jnp.sum(y, axis=0, keepdims=True)
        col2 = jnp.sum(y * y, axis=0, keepdims=True)
        m = jnp.sum(col, axis=1, keepdims=True) / cnt            # (1,1)
        q = jnp.sum(col2, axis=1, keepdims=True) / cnt
        r = jax.lax.rsqrt(q - m * m + _BN_EPS)
        return jnp.maximum((y - m) * r, 0.0)

    def bn_relu_2ch(y):
        # Same, but per-channel stats on a (N,128) slab: ch0 = lanes [0,64), ch1 = rest.
        cnt = float(y.shape[0] * 64)
        col = jnp.sum(y, axis=0, keepdims=True)
        col2 = jnp.sum(y * y, axis=0, keepdims=True)
        s_tot = jnp.sum(col, axis=1, keepdims=True)               # (1,1)
        q_tot = jnp.sum(col2, axis=1, keepdims=True)
        s0 = jnp.sum(jnp.where(is_c0, col, 0.0), axis=1, keepdims=True)
        q0 = jnp.sum(jnp.where(is_c0, col2, 0.0), axis=1, keepdims=True)
        m0 = s0 / cnt
        m1 = (s_tot - s0) / cnt
        r0 = jax.lax.rsqrt(q0 / cnt - m0 * m0 + _BN_EPS)
        r1 = jax.lax.rsqrt((q_tot - q0) / cnt - m1 * m1 + _BN_EPS)
        mean_row = jnp.where(is_c0, m0, m1)                       # (1,128)
        rstd_row = jnp.where(is_c0, r0, r1)
        return jnp.maximum((y - mean_row) * rstd_row, 0.0)

    x = x_ref[...]                                                # (N, 256) f32

    # Encoder conv_block 1: Conv(1->2, k3, s2, p1) + BN + ReLU   (16x16 -> 2 x 8x8)
    h1 = bn_relu_2ch(dot(x, a1_ref[...]))                         # (N, 128)

    # Encoder conv_block 2: Conv(2->1, k3, s2, p1) + BN + ReLU   (8x8 -> 4x4)
    h2 = bn_relu_1ch(dot(h1, a2_ref[...]))                        # (N, 16)

    # Folded Linear(16,50) -> Linear(50,16) -> deconv1, then BN + ReLU (4x4 -> 2 x 8x8)
    g1 = bn_relu_2ch(dot(h2, m_ref[...]) + bf_ref[...])           # (N, 128)

    # deconv_block 2: ConvT(2->1, k2, s2) + BN + ReLU            (8x8 -> 16x16)
    g2 = bn_relu_1ch(dot(g1, d2_ref[...]))                        # (N, 256)

    # decoder_layer Conv2d(1,1,k=1): scalar affine, weights from SMEM.
    o_ref[...] = g2 * scal_ref[0] + scal_ref[1]


# ----------------------------------------------------------------------------
# Forward pass (CONV_AE.forward)
# ----------------------------------------------------------------------------
def conv_ae_forward(operands, x_nchw):
    N = x_nchw.shape[0]
    # C=1: NCHW flatten is the same (h*16+w) row-major layout — free reshape.
    x = x_nchw.astype(jnp.float32).reshape(N, 256)

    vmem_args = [x, operands["A1"], operands["A2"],
                 operands["M"], operands["bf"], operands["D2"]]

    in_specs = ([pl.BlockSpec(memory_space=pltpu.MemorySpace.SMEM)]
                + [pl.BlockSpec(memory_space=pltpu.MemorySpace.VMEM)] * len(vmem_args))

    # Explicit VMEM budget: ~0.2 MiB of bf16 weights + ~6 KiB/row of f32 activations
    # (gridless call => single-buffered, no pipeline double-buffer waste).
    vmem_limit = int(min(48 * 1024 * 1024, 2 * 1024 * 1024 + 8 * 1024 * N))

    out = pl.pallas_call(
        _conv_ae_kernel,
        out_shape=jax.ShapeDtypeStruct((N, 256), jnp.float32),
        in_specs=in_specs,
        out_specs=pl.BlockSpec(memory_space=pltpu.MemorySpace.VMEM),
        compiler_params=pltpu.CompilerParams(vmem_limit_bytes=vmem_limit),
    )(operands["scal"], *vmem_args)

    return out.reshape(N, 1, 16, 16)


if __name__ == "__main__":
    key = jax.random.PRNGKey(0)
    params = init_params(jax.random.fold_in(key, 1))
    operands = prepare_operands(params)   # done once per model, outside jit
    x = jax.random.normal(jax.random.fold_in(key, 2), (2, 1, 16, 16), jnp.float32)

    fwd = jax.jit(functools.partial(conv_ae_forward, operands))
    out = jax.block_until_ready(fwd(x))

    assert out.shape == (2, 1, 16, 16), out.shape
    assert out.dtype == jnp.float32
    assert bool(jnp.all(jnp.isfinite(out)))
    print("KERNEL_OK")
</pallas_src>

<mosaic_0001>
module attributes {stable_mosaic.version = 11 : i64} {
  func.func @_conv_ae_kernel(%arg0: memref<2xf32, #tpu.memory_space<smem>>, %arg1: memref<2x256xf32, #tpu.memory_space<vmem>>, %arg2: memref<256x128xbf16, #tpu.memory_space<vmem>>, %arg3: memref<128x16xbf16, #tpu.memory_space<vmem>>, %arg4: memref<16x128xbf16, #tpu.memory_space<vmem>>, %arg5: memref<1x128xf32, #tpu.memory_space<vmem>>, %arg6: memref<128x256xbf16, #tpu.memory_space<vmem>>, %arg7: memref<2x256xf32, #tpu.memory_space<vmem>>) attributes {dimension_semantics = [], scalar_prefetch = 0 : i64, scratch_operands = 0 : i64, tpu.core_type = #tpu.core_type<tc>} {
    %0 = tpu.iota {dimensions = array<i32: 1>} : vector<1x128xi32>
    %c64_i32 = arith.constant 64 : i32
    %1 = vector.broadcast %c64_i32 : i32 to vector<1x128xi32>
    %2 = arith.cmpi slt, %0, %1 : vector<1x128xi32>
    %c0 = arith.constant 0 : index
    %c0_0 = arith.constant 0 : index
    %3 = vector.load %arg1[%c0, %c0_0] : memref<2x256xf32, #tpu.memory_space<vmem>>, vector<2x256xf32>
    %c0_1 = arith.constant 0 : index
    %c0_2 = arith.constant 0 : index
    %4 = vector.load %arg2[%c0_1, %c0_2] : memref<256x128xbf16, #tpu.memory_space<vmem>>, vector<256x128xbf16>
    %5 = arith.truncf %3 : vector<2x256xf32> to vector<2x256xbf16>
    %cst = arith.constant dense<0.000000e+00> : vector<2x128xf32>
    %6 = tpu.matmul %5, %4, %cst {dimension_numbers = #tpu.dot_dimension_numbers<[1], [0], [0], [1], [0, 0, 1, 1], [], []>} : vector<2x256xbf16>, vector<256x128xbf16>, vector<2x128xf32> -> vector<2x128xf32>
    %cst_3 = arith.constant dense<0.000000e+00> : vector<128xf32>
    %7 = vector.multi_reduction <add>, %6, %cst_3 [0] : vector<2x128xf32> to vector<128xf32>
    %8 = vector.shape_cast %7 : vector<128xf32> to vector<1x128xf32>
    %9 = arith.mulf %6, %6 : vector<2x128xf32>
    %cst_4 = arith.constant dense<0.000000e+00> : vector<128xf32>
    %10 = vector.multi_reduction <add>, %9, %cst_4 [0] : vector<2x128xf32> to vector<128xf32>
    %11 = vector.shape_cast %10 : vector<128xf32> to vector<1x128xf32>
    %cst_5 = arith.constant dense<0.000000e+00> : vector<1xf32>
    %12 = vector.multi_reduction <add>, %8, %cst_5 [1] : vector<1x128xf32> to vector<1xf32>
    %13 = vector.shape_cast %12 : vector<1xf32> to vector<1x1xf32>
    %cst_6 = arith.constant dense<0.000000e+00> : vector<1xf32>
    %14 = vector.multi_reduction <add>, %11, %cst_6 [1] : vector<1x128xf32> to vector<1xf32>
    %15 = vector.shape_cast %14 : vector<1xf32> to vector<1x1xf32>
    %cst_7 = arith.constant 0.000000e+00 : f32
    %16 = vector.broadcast %cst_7 : f32 to vector<1x128xf32>
    %17 = arith.select %2, %8, %16 : vector<1x128xi1>, vector<1x128xf32>
    %cst_8 = arith.constant dense<0.000000e+00> : vector<1xf32>
    %18 = vector.multi_reduction <add>, %17, %cst_8 [1] : vector<1x128xf32> to vector<1xf32>
    %19 = vector.shape_cast %18 : vector<1xf32> to vector<1x1xf32>
    %cst_9 = arith.constant 0.000000e+00 : f32
    %20 = vector.broadcast %cst_9 : f32 to vector<1x128xf32>
    %21 = arith.select %2, %11, %20 : vector<1x128xi1>, vector<1x128xf32>
    %cst_10 = arith.constant dense<0.000000e+00> : vector<1xf32>
    %22 = vector.multi_reduction <add>, %21, %cst_10 [1] : vector<1x128xf32> to vector<1xf32>
    %23 = vector.shape_cast %22 : vector<1xf32> to vector<1x1xf32>
    %cst_11 = arith.constant 1.280000e+02 : f32
    %24 = vector.broadcast %cst_11 : f32 to vector<1x1xf32>
    %25 = arith.divf %19, %24 : vector<1x1xf32>
    %26 = arith.subf %13, %19 : vector<1x1xf32>
    %cst_12 = arith.constant 1.280000e+02 : f32
    %27 = vector.broadcast %cst_12 : f32 to vector<1x1xf32>
    %28 = arith.divf %26, %27 : vector<1x1xf32>
    %cst_13 = arith.constant 1.280000e+02 : f32
    %29 = vector.broadcast %cst_13 : f32 to vector<1x1xf32>
    %30 = arith.divf %23, %29 : vector<1x1xf32>
    %31 = arith.mulf %25, %25 : vector<1x1xf32>
    %32 = arith.subf %30, %31 : vector<1x1xf32>
    %cst_14 = arith.constant 9.99999974E-6 : f32
    %33 = vector.broadcast %cst_14 : f32 to vector<1x1xf32>
    %34 = arith.addf %32, %33 : vector<1x1xf32>
    %35 = math.rsqrt %34 : vector<1x1xf32>
    %36 = arith.subf %15, %23 : vector<1x1xf32>
    %cst_15 = arith.constant 1.280000e+02 : f32
    %37 = vector.broadcast %cst_15 : f32 to vector<1x1xf32>
    %38 = arith.divf %36, %37 : vector<1x1xf32>
    %39 = arith.mulf %28, %28 : vector<1x1xf32>
    %40 = arith.subf %38, %39 : vector<1x1xf32>
    %cst_16 = arith.constant 9.99999974E-6 : f32
    %41 = vector.broadcast %cst_16 : f32 to vector<1x1xf32>
    %42 = arith.addf %40, %41 : vector<1x1xf32>
    %43 = math.rsqrt %42 : vector<1x1xf32>
    %44 = vector.shape_cast %25 : vector<1x1xf32> to vector<1x1xf32>
    %45 = vector.broadcast %44 : vector<1x1xf32> to vector<1x128xf32>
    %46 = vector.shape_cast %28 : vector<1x1xf32> to vector<1x1xf32>
    %47 = vector.broadcast %46 : vector<1x1xf32> to vector<1x128xf32>
    %48 = arith.select %2, %45, %47 : vector<1x128xi1>, vector<1x128xf32>
    %49 = vector.shape_cast %35 : vector<1x1xf32> to vector<1x1xf32>
    %50 = vector.broadcast %49 : vector<1x1xf32> to vector<1x128xf32>
    %51 = vector.shape_cast %43 : vector<1x1xf32> to vector<1x1xf32>
    %52 = vector.broadcast %51 : vector<1x1xf32> to vector<1x128xf32>
    %53 = arith.select %2, %50, %52 : vector<1x128xi1>, vector<1x128xf32>
    %54 = vector.broadcast %48 : vector<1x128xf32> to vector<2x128xf32>
    %55 = arith.subf %6, %54 : vector<2x128xf32>
    %56 = vector.broadcast %53 : vector<1x128xf32> to vector<2x128xf32>
    %57 = arith.mulf %55, %56 : vector<2x128xf32>
    %cst_17 = arith.constant 0.000000e+00 : f32
    %58 = vector.broadcast %cst_17 : f32 to vector<2x128xf32>
    %59 = arith.maximumf %57, %58 : vector<2x128xf32>
    %c0_18 = arith.constant 0 : index
    %c0_19 = arith.constant 0 : index
    %60 = vector.load %arg3[%c0_18, %c0_19] : memref<128x16xbf16, #tpu.memory_space<vmem>>, vector<128x16xbf16>
    %61 = arith.truncf %59 : vector<2x128xf32> to vector<2x128xbf16>
    %cst_20 = arith.constant dense<0.000000e+00> : vector<2x16xf32>
    %62 = tpu.matmul %61, %60, %cst_20 {dimension_numbers = #tpu.dot_dimension_numbers<[1], [0], [0], [1], [0, 0, 1, 1], [], []>} : vector<2x128xbf16>, vector<128x16xbf16>, vector<2x16xf32> -> vector<2x16xf32>
    %cst_21 = arith.constant dense<0.000000e+00> : vector<16xf32>
    %63 = vector.multi_reduction <add>, %62, %cst_21 [0] : vector<2x16xf32> to vector<16xf32>
    %64 = vector.shape_cast %63 : vector<16xf32> to vector<1x16xf32>
    %65 = arith.mulf %62, %62 : vector<2x16xf32>
    %cst_22 = arith.constant dense<0.000000e+00> : vector<16xf32>
    %66 = vector.multi_reduction <add>, %65, %cst_22 [0] : vector<2x16xf32> to vector<16xf32>
    %67 = vector.shape_cast %66 : vector<16xf32> to vector<1x16xf32>
    %cst_23 = arith.constant dense<0.000000e+00> : vector<1xf32>
    %68 = vector.multi_reduction <add>, %64, %cst_23 [1] : vector<1x16xf32> to vector<1xf32>
    %69 = vector.shape_cast %68 : vector<1xf32> to vector<1x1xf32>
    %cst_24 = arith.constant 3.200000e+01 : f32
    %70 = vector.broadcast %cst_24 : f32 to vector<1x1xf32>
    %71 = arith.divf %69, %70 : vector<1x1xf32>
    %cst_25 = arith.constant dense<0.000000e+00> : vector<1xf32>
    %72 = vector.multi_reduction <add>, %67, %cst_25 [1] : vector<1x16xf32> to vector<1xf32>
    %73 = vector.shape_cast %72 : vector<1xf32> to vector<1x1xf32>
    %cst_26 = arith.constant 3.200000e+01 : f32
    %74 = vector.broadcast %cst_26 : f32 to vector<1x1xf32>
    %75 = arith.divf %73, %74 : vector<1x1xf32>
    %76 = arith.mulf %71, %71 : vector<1x1xf32>
    %77 = arith.subf %75, %76 : vector<1x1xf32>
    %cst_27 = arith.constant 9.99999974E-6 : f32
    %78 = vector.broadcast %cst_27 : f32 to vector<1x1xf32>
    %79 = arith.addf %77, %78 : vector<1x1xf32>
    %80 = math.rsqrt %79 : vector<1x1xf32>
    %81 = vector.broadcast %71 : vector<1x1xf32> to vector<2x16xf32>
    %82 = arith.subf %62, %81 : vector<2x16xf32>
    %83 = vector.broadcast %80 : vector<1x1xf32> to vector<2x16xf32>
    %84 = arith.mulf %82, %83 : vector<2x16xf32>
    %cst_28 = arith.constant 0.000000e+00 : f32
    %85 = vector.broadcast %cst_28 : f32 to vector<2x16xf32>
    %86 = arith.maximumf %84, %85 : vector<2x16xf32>
    %c0_29 = arith.constant 0 : index
    %c0_30 = arith.constant 0 : index
    %87 = vector.load %arg4[%c0_29, %c0_30] : memref<16x128xbf16, #tpu.memory_space<vmem>>, vector<16x128xbf16>
    %88 = arith.truncf %86 : vector<2x16xf32> to vector<2x16xbf16>
    %cst_31 = arith.constant dense<0.000000e+00> : vector<2x128xf32>
    %89 = tpu.matmul %88, %87, %cst_31 {dimension_numbers = #tpu.dot_dimension_numbers<[1], [0], [0], [1], [0, 0, 1, 1], [], []>} : vector<2x16xbf16>, vector<16x128xbf16>, vector<2x128xf32> -> vector<2x128xf32>
    %c0_32 = arith.constant 0 : index
    %c0_33 = arith.constant 0 : index
    %90 = vector.load %arg5[%c0_32, %c0_33] : memref<1x128xf32, #tpu.memory_space<vmem>>, vector<1x128xf32>
    %91 = vector.broadcast %90 : vector<1x128xf32> to vector<2x128xf32>
    %92 = arith.addf %89, %91 : vector<2x128xf32>
    %cst_34 = arith.constant dense<0.000000e+00> : vector<128xf32>
    %93 = vector.multi_reduction <add>, %92, %cst_34 [0] : vector<2x128xf32> to vector<128xf32>
    %94 = vector.shape_cast %93 : vector<128xf32> to vector<1x128xf32>
    %95 = arith.mulf %92, %92 : vector<2x128xf32>
    %cst_35 = arith.constant dense<0.000000e+00> : vector<128xf32>
    %96 = vector.multi_reduction <add>, %95, %cst_35 [0] : vector<2x128xf32> to vector<128xf32>
    %97 = vector.shape_cast %96 : vector<128xf32> to vector<1x128xf32>
    %cst_36 = arith.constant dense<0.000000e+00> : vector<1xf32>
    %98 = vector.multi_reduction <add>, %94, %cst_36 [1] : vector<1x128xf32> to vector<1xf32>
    %99 = vector.shape_cast %98 : vector<1xf32> to vector<1x1xf32>
    %cst_37 = arith.constant dense<0.000000e+00> : vector<1xf32>
    %100 = vector.multi_reduction <add>, %97, %cst_37 [1] : vector<1x128xf32> to vector<1xf32>
    %101 = vector.shape_cast %100 : vector<1xf32> to vector<1x1xf32>
    %cst_38 = arith.constant 0.000000e+00 : f32
    %102 = vector.broadcast %cst_38 : f32 to vector<1x128xf32>
    %103 = arith.select %2, %94, %102 : vector<1x128xi1>, vector<1x128xf32>
    %cst_39 = arith.constant dense<0.000000e+00> : vector<1xf32>
    %104 = vector.multi_reduction <add>, %103, %cst_39 [1] : vector<1x128xf32> to vector<1xf32>
    %105 = vector.shape_cast %104 : vector<1xf32> to vector<1x1xf32>
    %cst_40 = arith.constant 0.000000e+00 : f32
    %106 = vector.broadcast %cst_40 : f32 to vector<1x128xf32>
    %107 = arith.select %2, %97, %106 : vector<1x128xi1>, vector<1x128xf32>
    %cst_41 = arith.constant dense<0.000000e+00> : vector<1xf32>
    %108 = vector.multi_reduction <add>, %107, %cst_41 [1] : vector<1x128xf32> to vector<1xf32>
    %109 = vector.shape_cast %108 : vector<1xf32> to vector<1x1xf32>
    %cst_42 = arith.constant 1.280000e+02 : f32
    %110 = vector.broadcast %cst_42 : f32 to vector<1x1xf32>
    %111 = arith.divf %105, %110 : vector<1x1xf32>
    %112 = arith.subf %99, %105 : vector<1x1xf32>
    %cst_43 = arith.constant 1.280000e+02 : f32
    %113 = vector.broadcast %cst_43 : f32 to vector<1x1xf32>
    %114 = arith.divf %112, %113 : vector<1x1xf32>
    %cst_44 = arith.constant 1.280000e+02 : f32
    %115 = vector.broadcast %cst_44 : f32 to vector<1x1xf32>
    %116 = arith.divf %109, %115 : vector<1x1xf32>
    %117 = arith.mulf %111, %111 : vector<1x1xf32>
    %118 = arith.subf %116, %117 : vector<1x1xf32>
    %cst_45 = arith.constant 9.99999974E-6 : f32
    %119 = vector.broadcast %cst_45 : f32 to vector<1x1xf32>
    %120 = arith.addf %118, %119 : vector<1x1xf32>
    %121 = math.rsqrt %120 : vector<1x1xf32>
    %122 = arith.subf %101, %109 : vector<1x1xf32>
    %cst_46 = arith.constant 1.280000e+02 : f32
    %123 = vector.broadcast %cst_46 : f32 to vector<1x1xf32>
    %124 = arith.divf %122, %123 : vector<1x1xf32>
    %125 = arith.mulf %114, %114 : vector<1x1xf32>
    %126 = arith.subf %124, %125 : vector<1x1xf32>
    %cst_47 = arith.constant 9.99999974E-6 : f32
    %127 = vector.broadcast %cst_47 : f32 to vector<1x1xf32>
    %128 = arith.addf %126, %127 : vector<1x1xf32>
    %129 = math.rsqrt %128 : vector<1x1xf32>
    %130 = vector.shape_cast %111 : vector<1x1xf32> to vector<1x1xf32>
    %131 = vector.broadcast %130 : vector<1x1xf32> to vector<1x128xf32>
    %132 = vector.shape_cast %114 : vector<1x1xf32> to vector<1x1xf32>
    %133 = vector.broadcast %132 : vector<1x1xf32> to vector<1x128xf32>
    %134 = arith.select %2, %131, %133 : vector<1x128xi1>, vector<1x128xf32>
    %135 = vector.shape_cast %121 : vector<1x1xf32> to vector<1x1xf32>
    %136 = vector.broadcast %135 : vector<1x1xf32> to vector<1x128xf32>
    %137 = vector.shape_cast %129 : vector<1x1xf32> to vector<1x1xf32>
    %138 = vector.broadcast %137 : vector<1x1xf32> to vector<1x128xf32>
    %139 = arith.select %2, %136, %138 : vector<1x128xi1>, vector<1x128xf32>
    %140 = vector.broadcast %134 : vector<1x128xf32> to vector<2x128xf32>
    %141 = arith.subf %92, %140 : vector<2x128xf32>
    %142 = vector.broadcast %139 : vector<1x128xf32> to vector<2x128xf32>
    %143 = arith.mulf %141, %142 : vector<2x128xf32>
    %cst_48 = arith.constant 0.000000e+00 : f32
    %144 = vector.broadcast %cst_48 : f32 to vector<2x128xf32>
    %145 = arith.maximumf %143, %144 : vector<2x128xf32>
    %c0_49 = arith.constant 0 : index
    %c0_50 = arith.constant 0 : index
    %146 = vector.load %arg6[%c0_49, %c0_50] : memref<128x256xbf16, #tpu.memory_space<vmem>>, vector<128x256xbf16>
    %147 = arith.truncf %145 : vector<2x128xf32> to vector<2x128xbf16>
    %cst_51 = arith.constant dense<0.000000e+00> : vector<2x256xf32>
    %148 = tpu.matmul %147, %146, %cst_51 {dimension_numbers = #tpu.dot_dimension_numbers<[1], [0], [0], [1], [0, 0, 1, 1], [], []>} : vector<2x128xbf16>, vector<128x256xbf16>, vector<2x256xf32> -> vector<2x256xf32>
    %cst_52 = arith.constant dense<0.000000e+00> : vector<256xf32>
    %149 = vector.multi_reduction <add>, %148, %cst_52 [0] : vector<2x256xf32> to vector<256xf32>
    %150 = vector.shape_cast %149 : vector<256xf32> to vector<1x256xf32>
    %151 = arith.mulf %148, %148 : vector<2x256xf32>
    %cst_53 = arith.constant dense<0.000000e+00> : vector<256xf32>
    %152 = vector.multi_reduction <add>, %151, %cst_53 [0] : vector<2x256xf32> to vector<256xf32>
    %153 = vector.shape_cast %152 : vector<256xf32> to vector<1x256xf32>
    %cst_54 = arith.constant dense<0.000000e+00> : vector<1xf32>
    %154 = vector.multi_reduction <add>, %150, %cst_54 [1] : vector<1x256xf32> to vector<1xf32>
    %155 = vector.shape_cast %154 : vector<1xf32> to vector<1x1xf32>
    %cst_55 = arith.constant 5.120000e+02 : f32
    %156 = vector.broadcast %cst_55 : f32 to vector<1x1xf32>
    %157 = arith.divf %155, %156 : vector<1x1xf32>
    %cst_56 = arith.constant dense<0.000000e+00> : vector<1xf32>
    %158 = vector.multi_reduction <add>, %153, %cst_56 [1] : vector<1x256xf32> to vector<1xf32>
    %159 = vector.shape_cast %158 : vector<1xf32> to vector<1x1xf32>
    %cst_57 = arith.constant 5.120000e+02 : f32
    %160 = vector.broadcast %cst_57 : f32 to vector<1x1xf32>
    %161 = arith.divf %159, %160 : vector<1x1xf32>
    %162 = arith.mulf %157, %157 : vector<1x1xf32>
    %163 = arith.subf %161, %162 : vector<1x1xf32>
    %cst_58 = arith.constant 9.99999974E-6 : f32
    %164 = vector.broadcast %cst_58 : f32 to vector<1x1xf32>
    %165 = arith.addf %163, %164 : vector<1x1xf32>
    %166 = math.rsqrt %165 : vector<1x1xf32>
    %167 = vector.broadcast %157 : vector<1x1xf32> to vector<2x256xf32>
    %168 = arith.subf %148, %167 : vector<2x256xf32>
    %169 = vector.broadcast %166 : vector<1x1xf32> to vector<2x256xf32>
    %170 = arith.mulf %168, %169 : vector<2x256xf32>
    %cst_59 = arith.constant 0.000000e+00 : f32
    %171 = vector.broadcast %cst_59 : f32 to vector<2x256xf32>
    %172 = arith.maximumf %170, %171 : vector<2x256xf32>
    %c0_60 = arith.constant 0 : index
    %173 = memref.load %arg0[%c0_60] : memref<2xf32, #tpu.memory_space<smem>>
    %174 = vector.broadcast %173 : f32 to vector<2x256xf32>
    %175 = arith.mulf %172, %174 : vector<2x256xf32>
    %c1 = arith.constant 1 : index
    %176 = memref.load %arg0[%c1] : memref<2xf32, #tpu.memory_space<smem>>
    %177 = vector.broadcast %176 : f32 to vector<2x256xf32>
    %178 = arith.addf %175, %177 : vector<2x256xf32>
    %c0_61 = arith.constant 0 : index
    %c0_62 = arith.constant 0 : index
    %179 = vector.load %arg7[%c0_61, %c0_62] : memref<2x256xf32, #tpu.memory_space<vmem>>, vector<2x256xf32>
    tpu.vector_store %arg7[%c0_61, %c0_62], %178 {strides = array<i32>} : memref<2x256xf32, #tpu.memory_space<vmem>>, vector<2x256xf32>,
    return
  }
}

</mosaic_0001>

<bundles_post_ra>
// kernel: conv_ae_forward.1
= control target key start
LH: loop header
LB: loop body
LE: loop exit
PB: predicated region body
PF: predicated region fallthrough
CT: control target
= control target key end

     0   :  { %12 = vsyncpa [#allocation3], 0  ;;  %s1129_s0 = inlined_call_operand.vmem [shape: f32[2], index: 0, kind: input, shape index: {}]   ;;  %s1130_s1 = inlined_call_operand.vmem [shape: f32[2,256], index: 1, kind: input, shape index: {}]   ;;  %s1131_s2 = inlined_call_operand.vmem [shape: bf16[256,128], index: 2, kind: input, shape index: {}]   ;;  %s1132_s3 = inlined_call_operand.vmem [shape: bf16[128,16], index: 3, kind: input, shape index: {}]   ;;  %s1133_s4 = inlined_call_operand.vmem [shape: bf16[16,128], index: 4, kind: input, shape index: {}]   ;;  %s1134_s5 = inlined_call_operand.vmem [shape: f32[1,128], index: 5, kind: input, shape index: {}]   ;;  %s1135_s6 = inlined_call_operand.vmem [shape: bf16[128,256], index: 6, kind: input, shape index: {}]   ;;  %s1136_s7 = inlined_call_operand.vmem [shape: f32[2,256], index: 7, kind: output, shape index: {}]  }
   0x1   :  { %s19_s26 = sshll.u32 %s1129_s0, 4  ;;  %s20_s26 = int_to_ptr.vmem [resolvable:$true] %s19_s26 }
   0x2   :  { %s894_s27 = scalar_lea.vmem %s20_s26, 16  ;;  %p899_p1 = scmp.lt.s32.totalorder %s20_s26, %s20_s26 }
   0x3   :  { %p895_p0 = scmp.ne.s32.totalorder %s20_s26, %s894_s27  ;;  %p900_p2 = scmp.lt.s32.totalorder %s894_s27, %s894_s27 }
   0x5   :  { %p901_p3 = por %p900_p2, %p899_p1 }
   0x7   :  { %p902_p4 = pnand %p901_p3, %p895_p0 }
   0x9   :  { %905 = shalt.err (!%p902_p4)
}
   0xa   :  { %s908_s28 = smov [#allocation2]  }
   0xb   :  { %22 = dma.vmem_to_smem %s20_s26, 16, %s908_s28, [#allocation3]  }
   0xc   :  { %906 = dma.done.wait [#allocation3], 16  }
   0xd   :  { %907 = vsyncadd [#allocation3], 4294967280 }
   0xe   :  { %38 = sfence }
   0xf   :  { %v833_v0 = vld [vmem:[%s1131_s2 + $0x40] sm:$0xff]   ;;  %v835_v2 = vld [vmem:[%s1131_s2 + $0x48] sm:$0xff]   ;;  %v837_v4 = vld [vmem:[%s1131_s2 + $0x50] sm:$0xff]   ;;  %vm225_vm0 = vcmask 1041408   ;;  %v40_v33 = vlaneseq  ;;  %v909_v45 = vmov 0.0   ;;  %vm910_vm2 = vmmov 0  }
  0x10   :  { %v834_v1 = vld [vmem:[%s1131_s2] sm:$0xff]   ;;  %770 = vmatprep.subr.bf16.mxu0 %v833_v0  ;;  %v836_v3 = vld [vmem:[%s1131_s2 + $0x8] sm:$0xff]   ;;  %v838_v5 = vld [vmem:[%s1131_s2 + $0x10] sm:$0xff]   ;;  %803 = vmatprep.subr.bf16.mxu1 %v909_v45  ;;  %vm376_vm3 = vcmask 123904   ;;  %vm392_vm4 = vcmask 130048   ;;  %s768_s10 = sld [smem:[#allocation2 + $0x1]] }
  0x11   :  { %771 = vmatpush3.bf16.msra.mxu0 %v834_v1  ;;  %v839_v6 = vld [vmem:[%s1131_s2 + $0x58] sm:$0xff]   ;;  %v841_v8 = vld [vmem:[%s1131_s2 + $0x60] sm:$0xff]   ;;  %v843_v10 = vld [vmem:[%s1131_s2 + $0x68] sm:$0xff]   ;;  %v1013_v38 = vand.u32 127, %v40_v33  ;;  %819 = vmatprep.mubr.msk.bf16.mxu1 %vm910_vm2, %v909_v45 }
  0x12   :  { %772 = vmatprep.subr.bf16.mxu0 %v835_v2  ;;  %v840_v7 = vld [vmem:[%s1131_s2 + $0x18] sm:$0xff]   ;;  %v842_v9 = vld [vmem:[%s1131_s2 + $0x20] sm:$0xff]   ;;  %v844_v12 = vld [vmem:[%s1131_s2 + $0x28] sm:$0xff]  }
  0x13   :  { %v724_v11 = vld.sshfl [vmem:[%s1130_s1] sm:$0x33 pattern:$0x76325410]  ;;  %v845_v14 = vld [vmem:[%s1131_s2 + $0x70] sm:$0xff]   ;;  %v847_v17 = vld [vmem:[%s1131_s2 + $0x78] sm:$0xff]  }
  0x14   :  { %v84_v13 = vcombine.high %v724_v11, %v724_v11  ;;  %v846_v16 = vld [vmem:[%s1131_s2 + $0x30] sm:$0xff]   ;;  %v848_v18 = vld [vmem:[%s1131_s2 + $0x38] sm:$0xff]   ;;  %v87_v19 = vpack.c.bf16 %v724_v11, %v724_v11  ;;  %vm42_vm1 = vcmp.lt.s32.totalorder %v1013_v38, 64  ;;  %v849_v44 = vld [vmem:[%s1132_s3] sm:$0xff]  }
  0x15   :  { %773 = vmatpush3.bf16.msra.mxu0 %v836_v3  ;;  %804 = vmatpush3.bf16.msra.mxu1 %v849_v44  ;;  %v850_v46 = vld [vmem:[%s1132_s3 + $0x8] sm:$0xff]   ;;  %v851_v47 = vld [vmem:[%s1132_s3 + $0x10] sm:$0xff]   ;;  %v852_v48 = vld [vmem:[%s1132_s3 + $0x18] sm:$0xff]  }
  0x16   :  { %774 = vmatprep.subr.bf16.mxu0 %v837_v4  ;;  %v88_v15 = vpack.c.bf16 %v84_v13, %v84_v13  ;;  %805 = vmatprep.subr.bf16.mxu1 %v909_v45  ;;  %v853_v49 = vld [vmem:[%s1132_s3 + $0x20] sm:$0xff]   ;;  %v854_v50 = vld [vmem:[%s1132_s3 + $0x28] sm:$0xff]   ;;  %v855_v51 = vld [vmem:[%s1132_s3 + $0x30] sm:$0xff]  }
  0x17   :  { %v856_v52 = vld [vmem:[%s1132_s3 + $0x38] sm:$0xff]  }
  0x18   :  { %217 = vmatprep.mubr.bf16.mxu0 %v88_v15 }
  0x19   :  { %775 = vmatpush3.bf16.msra.mxu0 %v838_v5  ;;  %806 = vmatpush3.bf16.msra.mxu1 %v850_v46 }
  0x1a   :  { %776 = vmatprep.subr.bf16.mxu0 %v839_v6  ;;  %807 = vmatprep.subr.bf16.mxu1 %v909_v45 }
  0x1d   :  { %777 = vmatpush3.bf16.msra.mxu0 %v840_v7  ;;  %808 = vmatpush3.bf16.msra.mxu1 %v851_v47 }
  0x1e   :  { %778 = vmatprep.subr.bf16.mxu0 %v841_v8  ;;  %809 = vmatprep.subr.bf16.mxu1 %v909_v45 }
  0x21   :  { %779 = vmatpush3.bf16.msra.mxu0 %v842_v9  ;;  %810 = vmatpush3.bf16.msra.mxu1 %v852_v48  ;;  %v858_v48 = vld [vmem:[%s1135_s6] ss:$8 sps:$4 sm:$0xff]  }
  0x22   :  { %780 = vmatprep.subr.bf16.mxu0 %v843_v10  ;;  %811 = vmatprep.subr.bf16.mxu1 %v909_v45 }
  0x25   :  { %781 = vmatpush3.bf16.msra.mxu0 %v844_v12  ;;  %812 = vmatpush3.bf16.msra.mxu1 %v853_v49  ;;  %v860_v49 = vld [vmem:[%s1135_s6 + $0x4] ss:$8 sps:$4 sm:$0xff]  }
  0x26   :  { %782 = vmatprep.subr.bf16.mxu0 %v845_v14  ;;  %813 = vmatprep.subr.bf16.mxu1 %v909_v45 }
  0x29   :  { %783 = vmatpush3.bf16.msra.mxu0 %v846_v16  ;;  %814 = vmatpush3.bf16.msra.mxu1 %v854_v50  ;;  %v749_v50 = vld [vmem:[%s1134_s5] ss:$0 sm:$0xff] }
  0x2a   :  { %784 = vmatprep.subr.bf16.mxu0 %v847_v17  ;;  %815 = vmatprep.subr.bf16.mxu1 %v909_v45 }
  0x2d   :  { %785 = vmatpush3.bf16.msra.mxu0 %v848_v18  ;;  %816 = vmatpush3.bf16.msra.mxu1 %v855_v51 }
  0x2e   :  { %823 = vmatprep.subr.bf16.mxu0 %v909_v45  ;;  %817 = vmatprep.subr.bf16.mxu1 %v909_v45 }
  0x30   :  { %218 = vmatmul.mubr.bf16.vlgmr.msra.gmra.mrb[0].mxu0 %v87_v19 }
  0x31   :  { %825 = vmatprep.mubr.msk.bf16.mxu0 %vm910_vm2, %v909_v45  ;;  %818 = vmatpush3.bf16.msra.mxu1 %v856_v52 }
  0x32   :  { %609 = vmatprep.subr.bf16.mxu1 %v860_v49 }
 0x103   :  { %v786_v20 = vpop.f32.mrb[0].mxu0 }
 0x104   :  { %v787_v21 = vpop.f32.mrb[1].mxu0 }
 0x105   :  { %v1006_v22 = vadd.f32 %v787_v21, %v786_v20  ;;  %v789_v23 = vpop.f32.mrb[2].mxu0 }
 0x106   :  { %v790_v24 = vpop.f32.mrb[3].mxu0 }
 0x107   :  { %v226_v25 = vsel %vm225_vm0, %v1006_v22, 0.0  ;;  %v233_v26 = vmul.f32 %v1006_v22, %v1006_v22 }
 0x108   :  { %v227_v27 = vrot.slane %v226_v25, 4 }
 0x109   :  { %v234_v28 = vsel %vm225_vm0, %v233_v26, 0.0 }
 0x10a   :  { %v228_v29 = vadd.f32 %v227_v27, %v226_v25  ;;  %v235_v30 = vrot.slane %v234_v28, 4 }
 0x10c   :  { %v229_v31 = vrot.slane %v228_v29, 2  ;;  %v236_v32 = vadd.f32 %v235_v30, %v234_v28 }
 0x10e   :  { %v230_v34 = vadd.f32 %v229_v31, %v228_v29  ;;  %v237_v35 = vrot.slane %v236_v32, 2 }
 0x110   :  { %v231_v36 = vrot.slane %v230_v34, 1  ;;  %v238_v37 = vadd.f32 %v237_v35, %v236_v32 }
 0x112   :  { %v232_v39 = vadd.f32 %v231_v36, %v230_v34  ;;  %v239_v40 = vrot.slane %v238_v37, 1  ;;  %v857_v34 = vld [vmem:[%s1133_s4] sm:$0xff]  }
 0x113   :  { %824 = vmatpush3.bf16.msra.mxu0 %v857_v34 }
 0x114   :  { %241 = vadd.xlane.f32.xlu0 %v232_v39  ;;  %v240_v41 = vadd.f32 %v239_v40, %v238_v37  ;;  %v245_v42 = vsel %vm42_vm1, %v232_v39, 0.0 }
 0x116   :  { %243 = vadd.xlane.f32.xlu1 %v240_v41  ;;  %v248_v43 = vsel %vm42_vm1, %v240_v41, 0.0 }
 0x118   :  { %246 = vadd.xlane.f32.xlu0 %v245_v42 }
 0x11a   :  { %249 = vadd.xlane.f32.xlu1 %v248_v43 }
 0x1a1   :  { %v242_v53 = vpop.xlane.xlu0 %241 }
 0x1a3   :  { %v244_v54 = vpop.xlane.xlu1 %243 }
 0x1a5   :  { %v247_v55 = vpop.xlane.xlu0 %246 }
 0x1a6   :  { %v252_v56 = vmul.f32 0.0078125, %v247_v55  ;;  %v253_v57 = vsub.f32 %v242_v53, %v247_v55 }
 0x1a7   :  { %v250_v58 = vpop.xlane.xlu1 %249 }
 0x1a8   :  { %v254_v59 = vmul.f32 0.0078125, %v253_v57  ;;  %v256_v60 = vmul.f32 %v252_v56, %v252_v56  ;;  %v255_v61 = vmul.f32 0.0078125, %v250_v58  ;;  %v260_v62 = vsub.f32 %v244_v54, %v250_v58 }
 0x1aa   :  { %v262_v63 = vmul.f32 %v254_v59, %v254_v59  ;;  %v257_v0 = vsub.f32 %v255_v61, %v256_v60  ;;  %v261_v1 = vmul.f32 0.0078125, %v260_v62  ;;  %v266_v5 = vsel %vm42_vm1, %v252_v56, %v254_v59 }
 0x1ab   :  { %v268_v8 = vsub.f32 %v1006_v22, %v266_v5 }
 0x1ac   :  { %v258_v2 = vadd.f32 1e-05, %v257_v0  ;;  %v263_v3 = vsub.f32 %v261_v1, %v262_v63 }
 0x1ae   :  { %v264_v4 = vadd.f32 1e-05, %v263_v3  ;;  %882 = vrsqrt.f32 %v258_v2 }
 0x1b0   :  { %884 = vrsqrt.f32 %v264_v4 }
 0x1b8   :  { %v883_v6 = vpop.eup %882 }
 0x1ba   :  { %v885_v7 = vpop.eup %884 }
 0x1bb   :  { %v267_v9 = vsel %vm42_vm1, %v883_v6, %v885_v7 }
 0x1bc   :  { %v269_v10 = vmul.f32 %v268_v8, %v267_v9  ;;  %v863_v9 = vld [vmem:[%s1135_s6 + $0x14] ss:$8 sps:$4 sm:$0xff]  }
 0x1be   :  { %v270_v11 = vmax.f32 %v269_v10, 0.0  ;;  %v861_v10 = vld [vmem:[%s1135_s6 + $0x10] ss:$8 sps:$4 sm:$0xff]  }
 0x1c0   :  { %v287_v12 = vpack.c.bf16 %v270_v11, %v270_v11  ;;  %v866_v11 = vld [vmem:[%s1135_s6 + $0x24] ss:$8 sps:$4 sm:$0xff]  }
 0x1c2   :  { %820 = vmatmul.mubr.bf16.vlgmr.msra.gmra.mrb[0].mxu1 %v287_v12  ;;  %v864_v12 = vld [vmem:[%s1135_s6 + $0x20] ss:$8 sps:$4 sm:$0xff]  }
 0x1c3   :  { %610 = vmatpush1.bf16.msra.mxu1 %v858_v48 }
 0x1c4   :  { %611 = vmatprep.subr.bf16.mxu1 %v863_v9 }
 0x1c7   :  { %612 = vmatpush1.bf16.msra.mxu1 %v861_v10 }
 0x1c8   :  { %613 = vmatprep.subr.bf16.mxu1 %v866_v11 }
 0x1cb   :  { %614 = vmatpush1.bf16.msra.mxu1 %v864_v12 }
 0x295   :  { %v370_v13 = vpop.f32.mrb[0].mxu1 }
 0x296   :  { %v377_v14 = vsel %vm376_vm3, %v370_v13, 0.0  ;;  %v384_v15 = vmul.f32 %v370_v13, %v370_v13  ;;  %v821_v16 = vpop.f32.mrb[1].mxu1 }
 0x297   :  { %v378_v17 = vrot.slane %v377_v14, 4  ;;  %v373_v18 = vpop.f32.mrb[2].mxu1  ;;  %v872_v16 = vld [vmem:[%s1135_s6 + $0x44] ss:$8 sps:$4 sm:$0xff]  }
 0x298   :  { %v385_v19 = vsel %vm376_vm3, %v384_v15, 0.0  ;;  %v822_v20 = vpop.f32.mrb[3].mxu1  ;;  %v870_v15 = vld [vmem:[%s1135_s6 + $0x40] ss:$8 sps:$4 sm:$0xff]   ;;  %v873_v18 = vld [vmem:[%s1135_s6 + $0x50] ss:$8 sps:$4 sm:$0xff]  }
 0x299   :  { %v379_v21 = vadd.f32 %v378_v17, %v377_v14  ;;  %v386_v23 = vrot.slane %v385_v19, 4  ;;  %v867_v14 = vld [vmem:[%s1135_s6 + $0x30] ss:$8 sps:$4 sm:$0xff]   ;;  %v875_v17 = vld [vmem:[%s1135_s6 + $0x54] ss:$8 sps:$4 sm:$0xff]  }
 0x29a   :  { %v878_v20 = vld [vmem:[%s1135_s6 + $0x64] ss:$8 sps:$4 sm:$0xff]  }
 0x29b   :  { %v380_v24 = vrot.slane %v379_v21, 2  ;;  %v387_v22 = vadd.f32 %v386_v23, %v385_v19  ;;  %v911_v19 = vmov 0   ;;  %v881_v23 = vld [vmem:[%s1135_s6 + $0x74] ss:$8 sps:$4 sm:$0xff]  }
 0x29c   :  { %641 = vmatprep.mubr.bf16.mxu1 %v911_v19 }
 0x29d   :  { %v381_v25 = vadd.f32 %v380_v24, %v379_v21  ;;  %v388_v26 = vrot.slane %v387_v22, 2  ;;  %v876_v21 = vld [vmem:[%s1135_s6 + $0x60] ss:$8 sps:$4 sm:$0xff]   ;;  %v879_v24 = vld [vmem:[%s1135_s6 + $0x70] ss:$8 sps:$4 sm:$0xff]  }
 0x29f   :  { %v382_v27 = vrot.slane %v381_v25, 1  ;;  %v389_v28 = vadd.f32 %v388_v26, %v387_v22 }
 0x2a1   :  { %v383_v29 = vadd.f32 %v382_v27, %v381_v25  ;;  %v390_v30 = vrot.slane %v389_v28, 1 }
 0x2a3   :  { %v393_v31 = vsel %vm392_vm4, %v383_v29, 0.0  ;;  %v391_v32 = vadd.f32 %v390_v30, %v389_v28 }
 0x2a4   :  { %394 = vadd.xlane.f32.xlu0 %v393_v31 }
 0x2a5   :  { %v398_v33 = vsel %vm392_vm4, %v391_v32, 0.0 }
 0x2a6   :  { %399 = vadd.xlane.f32.xlu1 %v398_v33 }
 0x331   :  { %v395_v35 = vpop.xlane.xlu0 %394 }
 0x332   :  { %v397_v36 = vmul.f32 0.03125, %v395_v35 }
 0x333   :  { %v400_v37 = vpop.xlane.xlu1 %399 }
 0x334   :  { %v402_v39 = vmul.f32 %v397_v36, %v397_v36  ;;  %v401_v40 = vmul.f32 0.03125, %v400_v37  ;;  %v406_v43 = vsub.f32 %v370_v13, %v397_v36  ;;  %v869_v13 = vld [vmem:[%s1135_s6 + $0x34] ss:$8 sps:$4 sm:$0xff]   ;;  %s699_s6 = sld [smem:[#allocation2]] }
 0x335   :  { %615 = vmatprep.subr.bf16.mxu1 %v869_v13 }
 0x336   :  { %v403_v41 = vsub.f32 %v401_v40, %v402_v39  ;;  %616 = vmatpush1.bf16.msra.mxu1 %v867_v14 }
 0x337   :  { %617 = vmatprep.subr.bf16.mxu1 %v872_v16 }
 0x338   :  { %v404_v42 = vadd.f32 1e-05, %v403_v41 }
 0x33a   :  { %886 = vrsqrt.f32 %v404_v42  ;;  %618 = vmatpush1.bf16.msra.mxu1 %v870_v15 }
 0x33b   :  { %619 = vmatprep.subr.bf16.mxu1 %v875_v17 }
 0x33e   :  { %620 = vmatpush1.bf16.msra.mxu1 %v873_v18 }
 0x33f   :  { %621 = vmatprep.subr.bf16.mxu1 %v878_v20 }
 0x342   :  { %622 = vmatpush1.bf16.msra.mxu1 %v876_v21 }
 0x343   :  { %623 = vmatprep.subr.bf16.mxu1 %v881_v23 }
 0x344   :  { %v887_v44 = vpop.eup %886 }
 0x345   :  { %v407_v45 = vmul.f32 %v887_v44, %v406_v43 }
 0x346   :  { %624 = vmatpush1.bf16.msra.mxu1 %v879_v24 }
 0x347   :  { %v408_v46 = vmax.f32 %v407_v45, 0.0 }
 0x349   :  { %v411_v47 = vpack.c.bf16 %v408_v46, %v408_v46 }
 0x34b   :  { %826 = vmatmul.mubr.msk.bf16.vlgmr.msra.gmra.mrb[4].mxu0 %vm392_vm4, %v411_v47 }
 0x41e   :  { %v462_v51 = vpop.f32.mrb[4].mxu0 }
 0x41f   :  { %v1064_v52 = vadd.f32 %v749_v50, %v462_v51  ;;  %v827_v53 = vpop.f32.mrb[5].mxu0 }
 0x420   :  { %v465_v54 = vpop.f32.mrb[6].mxu0 }
 0x421   :  { %v468_v55 = vsel %vm225_vm0, %v1064_v52, 0.0  ;;  %v475_v56 = vmul.f32 %v1064_v52, %v1064_v52  ;;  %v828_v57 = vpop.f32.mrb[7].mxu0 }
 0x422   :  { %v469_v58 = vrot.slane %v468_v55, 4 }
 0x423   :  { %v476_v59 = vsel %vm225_vm0, %v475_v56, 0.0 }
 0x424   :  { %v470_v60 = vadd.f32 %v469_v58, %v468_v55  ;;  %v477_v61 = vrot.slane %v476_v59, 4 }
 0x426   :  { %v471_v62 = vrot.slane %v470_v60, 2  ;;  %v478_v63 = vadd.f32 %v477_v61, %v476_v59 }
 0x428   :  { %v472_v0 = vadd.f32 %v471_v62, %v470_v60  ;;  %v479_v1 = vrot.slane %v478_v63, 2 }
 0x42a   :  { %v473_v2 = vrot.slane %v472_v0, 1  ;;  %v480_v3 = vadd.f32 %v479_v1, %v478_v63 }
 0x42c   :  { %v474_v4 = vadd.f32 %v473_v2, %v472_v0  ;;  %v481_v5 = vrot.slane %v480_v3, 1 }
 0x42e   :  { %483 = vadd.xlane.f32.xlu0 %v474_v4  ;;  %v487_v6 = vsel %vm42_vm1, %v474_v4, 0.0  ;;  %v482_v7 = vadd.f32 %v481_v5, %v480_v3 }
 0x42f   :  { %488 = vadd.xlane.f32.xlu1 %v487_v6 }
 0x430   :  { %v490_v8 = vsel %vm42_vm1, %v482_v7, 0.0 }
 0x432   :  { %485 = vadd.xlane.f32.xlu0 %v482_v7 }
 0x433   :  { %491 = vadd.xlane.f32.xlu1 %v490_v8 }
 0x4bb   :  { %v484_v22 = vpop.xlane.xlu0 %483 }
 0x4bc   :  { %v489_v25 = vpop.xlane.xlu1 %488 }
 0x4bd   :  { %v493_v26 = vmul.f32 0.0078125, %v489_v25  ;;  %v494_v27 = vsub.f32 %v484_v22, %v489_v25 }
 0x4bf   :  { %v495_v28 = vmul.f32 0.0078125, %v494_v27  ;;  %v486_v29 = vpop.xlane.xlu0 %485  ;;  %v497_v31 = vmul.f32 %v493_v26, %v493_v26 }
 0x4c0   :  { %v492_v30 = vpop.xlane.xlu1 %491 }
 0x4c1   :  { %v496_v32 = vmul.f32 0.0078125, %v492_v30  ;;  %v501_v33 = vsub.f32 %v486_v29, %v492_v30  ;;  %v503_v34 = vmul.f32 %v495_v28, %v495_v28  ;;  %v507_v41 = vsel %vm42_vm1, %v493_v26, %v495_v28 }
 0x4c2   :  { %v509_v44 = vsub.f32 %v1064_v52, %v507_v41 }
 0x4c3   :  { %v498_v35 = vsub.f32 %v496_v32, %v497_v31  ;;  %v502_v36 = vmul.f32 0.0078125, %v501_v33  ;;  %v700_v32 = vstv %s699_s6 }
 0x4c5   :  { %v499_v37 = vadd.f32 1e-05, %v498_v35  ;;  %v504_v39 = vsub.f32 %v502_v36, %v503_v34  ;;  %v704_v35 = vstv %s768_s10 }
 0x4c7   :  { %v505_v40 = vadd.f32 1e-05, %v504_v39  ;;  %888 = vrsqrt.f32 %v499_v37 }
 0x4c9   :  { %890 = vrsqrt.f32 %v505_v40 }
 0x4d1   :  { %v889_v42 = vpop.eup %888 }
 0x4d3   :  { %v891_v43 = vpop.eup %890 }
 0x4d4   :  { %v508_v45 = vsel %vm42_vm1, %v889_v42, %v891_v43 }
 0x4d5   :  { %v510_v46 = vmul.f32 %v509_v44, %v508_v45 }
 0x4d7   :  { %v511_v47 = vmax.f32 %v510_v46, 0.0 }
 0x4d9   :  { %v528_v48 = vpack.c.bf16 %v511_v47, %v511_v47 }
 0x4db   :  { %642 = vmatmul.mubr.bf16.vlgmr.msra.gmra.mrb[4].mxu1 %v528_v48 }
 0x5ae   :  { %v643_v49 = vpop.f32.mrb[4].mxu1 }
 0x5af   :  { %v650_v50 = vsel %vm225_vm0, %v643_v49, 0.0  ;;  %v664_v51 = vmul.f32 %v643_v49, %v643_v49  ;;  %v645_v53 = vpop.f32.mrb[5].mxu1 }
 0x5b0   :  { %v651_v54 = vrot.slane %v650_v50, 4  ;;  %v657_v55 = vsel %vm225_vm0, %v645_v53, 0.0  ;;  %v665_v56 = vmul.f32 %v645_v53, %v645_v53  ;;  %v647_v57 = vpop.f32.mrb[6].mxu1 }
 0x5b1   :  { %v666_v58 = vsel %vm225_vm0, %v664_v51, 0.0  ;;  %v658_v52 = vrot.slane %v657_v55, 4  ;;  %v648_v59 = vpop.f32.mrb[7].mxu1 }
 0x5b2   :  { %v652_v38 = vadd.f32 %v651_v54, %v650_v50  ;;  %v667_v60 = vrot.slane %v666_v58, 4  ;;  %v673_v61 = vsel %vm225_vm0, %v665_v56, 0.0 }
 0x5b3   :  { %v659_v62 = vadd.f32 %v658_v52, %v657_v55  ;;  %v674_v63 = vrot.slane %v673_v61, 4 }
 0x5b4   :  { %v653_v0 = vrot.slane %v652_v38, 2  ;;  %v668_v1 = vadd.f32 %v667_v60, %v666_v58 }
 0x5b5   :  { %v660_v2 = vrot.slane %v659_v62, 2  ;;  %v675_v3 = vadd.f32 %v674_v63, %v673_v61 }
 0x5b6   :  { %v654_v4 = vadd.f32 %v653_v0, %v652_v38  ;;  %v669_v5 = vrot.slane %v668_v1, 2 }
 0x5b7   :  { %v661_v6 = vadd.f32 %v660_v2, %v659_v62  ;;  %v676_v7 = vrot.slane %v675_v3, 2 }
 0x5b8   :  { %v655_v8 = vrot.slane %v654_v4, 1  ;;  %v670_v9 = vadd.f32 %v669_v5, %v668_v1 }
 0x5b9   :  { %v662_v10 = vrot.slane %v661_v6, 1  ;;  %v677_v11 = vadd.f32 %v676_v7, %v675_v3 }
 0x5ba   :  { %v656_v12 = vadd.f32 %v655_v8, %v654_v4  ;;  %v671_v13 = vrot.slane %v670_v9, 1 }
 0x5bb   :  { %v663_v14 = vadd.f32 %v662_v10, %v661_v6  ;;  %v678_v15 = vrot.slane %v677_v11, 1 }
 0x5bc   :  { %v672_v16 = vadd.f32 %v671_v13, %v670_v9 }
 0x5bd   :  { %v680_v17 = vadd.f32 %v663_v14, %v656_v12  ;;  %v679_v18 = vadd.f32 %v678_v15, %v677_v11 }
 0x5bf   :  { %681 = vadd.xlane.f32.xlu0 %v680_v17  ;;  %v685_v19 = vadd.f32 %v679_v18, %v672_v16 }
 0x5c1   :  { %686 = vadd.xlane.f32.xlu1 %v685_v19 }
 0x64c   :  { %v682_v20 = vpop.xlane.xlu0 %681 }
 0x64d   :  { %v684_v21 = vmul.f32 0.001953125, %v682_v20 }
 0x64e   :  { %v687_v23 = vpop.xlane.xlu1 %686 }
 0x64f   :  { %v688_v24 = vmul.f32 0.001953125, %v687_v23  ;;  %v689_v22 = vmul.f32 %v684_v21, %v684_v21  ;;  %v693_v27 = vsub.f32 %v643_v49, %v684_v21  ;;  %v694_v28 = vsub.f32 %v645_v53, %v684_v21 }
 0x651   :  { %v690_v25 = vsub.f32 %v688_v24, %v689_v22 }
 0x653   :  { %v691_v26 = vadd.f32 1e-05, %v690_v25 }
 0x655   :  { %892 = vrsqrt.f32 %v691_v26 }
 0x65f   :  { %v893_v29 = vpop.eup %892 }
 0x660   :  { %v695_v30 = vmul.f32 %v893_v29, %v693_v27  ;;  %v696_v31 = vmul.f32 %v893_v29, %v694_v28 }
 0x662   :  { %v697_v33 = vmax.f32 %v695_v30, 0.0  ;;  %v698_v34 = vmax.f32 %v696_v31, 0.0 }
 0x664   :  { %v701_v36 = vmul.f32 %v700_v32, %v697_v33  ;;  %v702_v37 = vmul.f32 %v700_v32, %v698_v34 }
 0x666   :  { %v705_v39 = vadd.f32 %v704_v35, %v701_v36  ;;  %v706_v40 = vadd.f32 %v704_v35, %v702_v37 }
 0x668   :  { %v709_v41 = vcombine.low %v705_v39, %v706_v40 }
 0x66a   :  { %769 = vst.sshfl [vmem:[%s1136_s7] sm:$0x33 pattern:$0x76325410] %v709_v41 }
 0x66b   :  { %723 = vsyncpa [#allocation3], 1 }

</bundles_post_ra>
